<compile_context>
chip_gen: v7x
topology: tpu7x:2x2x1
jax: 0.10.0
libtpu: 0.0.40
codegen_flags: <defaults>
</compile_context>

<pallas_src>
import functools

import jax
import jax.numpy as jnp
from jax.experimental import pallas as pl
from jax.experimental.pallas import tpu as pltpu

N_FEATURES = 10   # self.n
K_FACTORS = 20    # self.k


def _fm_tile_kernel(a_ref, vsqsum_ref, xt_ref, lin_ref, part_ref, *, mask_b):
    """One lane-dense batch tile.

    a_ref      : (k+1, n) VMEM  -- row 0 = linear weight, rows 1..k = v (VMEM-resident).
    vsqsum_ref : (1, n)   VMEM  -- column sums of v*v (VMEM-resident).
    xt_ref     : (n, TB)  VMEM  -- streamed tile of x^T (batch on the 128-lane axis).
    lin_ref    : (1, TB)  VMEM out -- (x @ w^T)^T for this tile (bias added outside).
    part_ref   : (1, 128) VMEM out -- this tile's contribution to the GLOBAL FM sum
                                      (scalar stored in lane 0 of a lane-dense row).
    mask_b     : Python int or None -- number of valid batch columns (None = all valid).
    """
    xt = xt_ref[...]                                                    # (n, TB)
    # One fused MXU push: row 0 -> (x @ w.T)^T, rows 1..k -> (x @ v.T)^T.
    y = jnp.dot(a_ref[...], xt, preferred_element_type=jnp.float32)     # (k+1, TB)
    lin = y[0:1, :]                                                     # aligned 1-row slice
    # sum_k fm1 = sum over all rows of y^2 minus the linear row's square.
    fm1_sum = jnp.sum(y * y, axis=0, keepdims=True) - lin * lin         # (1, TB)
    # sum_k fm2[b] = sum_j (sum_k v_kj^2) * x_bj^2  -- a (1, n) x (n, TB) matvec.
    fm2_sum = jnp.dot(vsqsum_ref[...], xt * xt,
                      preferred_element_type=jnp.float32)               # (1, TB)
    part = fm1_sum - fm2_sum                                            # (1, TB)

    if mask_b is not None:   # static: only traced when the grid over-covers the batch
        tb = xt_ref.shape[1]
        col = pl.program_id(0) * tb + jax.lax.broadcasted_iota(jnp.int32, (1, tb), 1)
        part = jnp.where(col < mask_b, part, 0.0)

    # Per-tile scalar reduction of the FM interaction, written lane-dense (lane 0 only).
    tile_sum = jnp.sum(part, axis=1, keepdims=True)                     # (1, 1)
    lane = jax.lax.broadcasted_iota(jnp.int32, (1, 128), 1)
    part_ref[...] = jnp.where(lane == 0, tile_sum, 0.0)                 # (1, 128)
    lin_ref[...] = lin                                                  # (1, TB)


def _tile_plan(batch, tile_b):
    """Clamp the requested tile to the 128-aligned batch; return (tile, num_tiles)."""
    aligned = ((batch + 127) // 128) * 128
    tile = max(128, (min(tile_b, aligned) // 128) * 128)
    num_tiles = -(-batch // tile)
    return tile, num_tiles


def _fm_pallas(xt, valid_b, v, lin_w, tile, num_tiles):
    """Run the tiled kernel.  xt: (n, b_cols) feature-major; valid_b: true batch size."""
    n, b_cols = xt.shape
    k = v.shape[0]
    b_span = num_tiles * tile                        # columns covered by the grid (>= b_cols)
    mask_b = valid_b if valid_b < b_span else None   # mask padded / out-of-range columns

    a = jnp.concatenate([lin_w, v], axis=0).astype(jnp.float32)                  # (k+1, n)
    vsqsum = jnp.sum(jnp.square(v), axis=0, keepdims=True).astype(jnp.float32)   # (1, n)

    lin_t, part_t = pl.pallas_call(
        functools.partial(_fm_tile_kernel, mask_b=mask_b),
        out_shape=(
            jax.ShapeDtypeStruct((1, b_span), jnp.float32),             # lin^T, lane-dense
            jax.ShapeDtypeStruct((1, num_tiles * 128), jnp.float32),    # per-tile FM partials
        ),
        grid=(num_tiles,),
        in_specs=[
            pl.BlockSpec((k + 1, n), lambda i: (0, 0)),    # fused [w; v], VMEM-resident
            pl.BlockSpec((1, n), lambda i: (0, 0)),        # sum_k v^2,   VMEM-resident
            pl.BlockSpec((n, tile), lambda i: (0, i)),     # streamed x^T batch tile
        ],
        out_specs=(
            pl.BlockSpec((1, tile), lambda i: (0, i)),     # lin^T (lane-dense)
            pl.BlockSpec((1, 128), lambda i: (0, i)),      # tiny per-tile FM partial
        ),
        compiler_params=pltpu.CompilerParams(
            dimension_semantics=("parallel",),             # megacore-shardable on v7x
            vmem_limit_bytes=64 * 1024 * 1024,             # headroom for wide batch tiles
        ),
        cost_estimate=pl.CostEstimate(
            flops=b_span * (2 * n * (k + 2) + 6 * (k + 1)),
            transcendentals=0,
            bytes_accessed=4 * (n * b_cols + b_span + 128 * num_tiles + (k + 2) * n),
        ),
    )(a, vsqsum, xt.astype(jnp.float32))
    return lin_t, part_t


def _finalize(lin_t, part_t, lin_b, batch):
    # Batch-GLOBAL FM interaction (a single scalar, as in the PyTorch model), bias, sigmoid.
    interaction = 0.5 * jnp.sum(part_t)
    lin = lin_t[0, :batch] + lin_b
    return jax.nn.sigmoid(lin + interaction)[:, None]


@functools.partial(jax.jit, static_argnames=("tile_b",))
def fm_forward(x, v, lin_w, lin_b, *, tile_b=65536):
    """PyTorch-layout entry.  x: (B, n); v: (k, n); lin_w: (1, n); lin_b: () -> (B, 1)."""
    B, _ = x.shape
    tile, num_tiles = _tile_plan(B, tile_b)
    span = num_tiles * tile
    # Exactly one fused transpose+pad copy.  If the producer can emit x feature-major,
    # call fm_forward_transposed instead and skip this HBM round-trip entirely.
    xt = jnp.pad(jnp.transpose(x).astype(jnp.float32), ((0, 0), (0, span - B)))
    lin_t, part_t = _fm_pallas(xt, B, v, lin_w, tile, num_tiles)
    return _finalize(lin_t, part_t, lin_b, B)


@functools.partial(jax.jit, static_argnames=("tile_b",))
def fm_forward_transposed(xt, v, lin_w, lin_b, *, tile_b=65536):
    """Preferred entry point: xt is x^T with shape (n, B), streamed without any
    wrapper-side transpose/pad materialisation (ragged tails are masked in-kernel)."""
    _, B = xt.shape
    tile, num_tiles = _tile_plan(B, tile_b)
    lin_t, part_t = _fm_pallas(xt, B, v, lin_w, tile, num_tiles)
    return _finalize(lin_t, part_t, lin_b, B)


def reference_forward(x, v, lin_w, lin_b):
    fm1 = jnp.square(x @ v.T)
    fm2 = jnp.square(x) @ jnp.square(v.T)
    lin = x @ lin_w.T + lin_b
    return jax.nn.sigmoid(lin + 0.5 * jnp.sum(fm1 - fm2))


if __name__ == "__main__":
    key = jax.random.PRNGKey(0)
    k_x, k_v, k_w, k_b = jax.random.split(key, 4)

    # Deterministic parameters mirroring FM_model.__init__ shapes:
    #   v ~ randn(k, n); Linear(n, 1): weight (1, n), bias () ~ U(-1/sqrt(n), 1/sqrt(n)).
    v = jax.random.normal(k_v, (K_FACTORS, N_FEATURES), dtype=jnp.float32)
    bound = N_FEATURES ** -0.5
    lin_w = jax.random.uniform(k_w, (1, N_FEATURES), minval=-bound, maxval=bound,
                               dtype=jnp.float32)
    lin_b = jax.random.uniform(k_b, (), minval=-bound, maxval=bound, dtype=jnp.float32)

    # 1) Small batch, single tile (tile clamps to 128; masked padded columns exercised).
    B = 4
    x = jax.random.normal(k_x, (B, N_FEATURES), dtype=jnp.float32)
    out = jax.block_until_ready(fm_forward(x, v, lin_w, lin_b))
    ref = reference_forward(x, v, lin_w, lin_b)
    assert out.shape == (B, 1), out.shape
    assert jnp.allclose(out, ref, atol=1e-5, rtol=1e-5), (out, ref)

    # 2) Multi-tile batch with a ragged tail (600 over 3 tiles of 256): validates the
    #    cross-tile accumulation of the GLOBAL FM sum and the masked padded columns.
    B2 = 600
    x2 = jax.random.normal(jax.random.PRNGKey(1), (B2, N_FEATURES), dtype=jnp.float32)
    out2 = jax.block_until_ready(fm_forward(x2, v, lin_w, lin_b, tile_b=256))
    ref2 = reference_forward(x2, v, lin_w, lin_b)
    assert out2.shape == (B2, 1), out2.shape
    assert jnp.allclose(out2, ref2, atol=1e-4, rtol=1e-4), (out2, ref2)

    # 3) Preferred feature-major entry point: x^T streamed with no transpose/pad copy
    #    (batch is an exact multiple of the tile -> two full tiles, both TCs usable).
    B3 = 512
    x3 = jax.random.normal(jax.random.PRNGKey(2), (B3, N_FEATURES), dtype=jnp.float32)
    out3 = jax.block_until_ready(
        fm_forward_transposed(jnp.transpose(x3), v, lin_w, lin_b, tile_b=256))
    ref3 = reference_forward(x3, v, lin_w, lin_b)
    assert out3.shape == (B3, 1), out3.shape
    assert jnp.allclose(out3, ref3, atol=1e-4, rtol=1e-4), (out3, ref3)

    print("KERNEL_OK")
</pallas_src>

<mosaic_0001>
module attributes {stable_mosaic.version = 11 : i64} {
  func.func @_fm_tile_kernel(%arg0: i32, %arg1: memref<21x10xf32, #tpu.memory_space<vmem>>, %arg2: memref<1x10xf32, #tpu.memory_space<vmem>>, %arg3: memref<10x128xf32, #tpu.memory_space<vmem>>, %arg4: memref<1x128xf32, #tpu.memory_space<vmem>>, %arg5: memref<1x128xf32, #tpu.memory_space<vmem>>) attributes {dimension_semantics = [#tpu.dimension_semantics<parallel>], iteration_bounds = array<i64: 1>, scalar_prefetch = 0 : i64, scratch_operands = 0 : i64, tpu.core_type = #tpu.core_type<tc>, window_params = [{pipeline_mode = #tpu.pipeline_mode<synchronous>, transform_indices = @transform_0, window_bounds = array<i64: 21, 10>}, {pipeline_mode = #tpu.pipeline_mode<synchronous>, transform_indices = @transform_1, window_bounds = array<i64: 1, 10>}, {transform_indices = @transform_2, window_bounds = array<i64: 10, 128>}, {transform_indices = @transform_3, window_bounds = array<i64: 1, 128>}, {transform_indices = @transform_4, window_bounds = array<i64: 1, 128>}]} {
    %c0 = arith.constant 0 : index
    %c0_0 = arith.constant 0 : index
    %0 = vector.load %arg3[%c0, %c0_0] : memref<10x128xf32, #tpu.memory_space<vmem>>, vector<10x128xf32>
    %c0_1 = arith.constant 0 : index
    %c0_2 = arith.constant 0 : index
    %1 = vector.load %arg1[%c0_1, %c0_2] : memref<21x10xf32, #tpu.memory_space<vmem>>, vector<21x10xf32>
    %cst = arith.constant dense<0.000000e+00> : vector<21x128xf32>
    %2 = tpu.matmul %1, %0, %cst {dimension_numbers = #tpu.dot_dimension_numbers<[1], [0], [0], [1], [0, 0, 1, 1], [], []>} : vector<21x10xf32>, vector<10x128xf32>, vector<21x128xf32> -> vector<21x128xf32>
    %3 = vector.extract_strided_slice %2 {offsets = [0, 0], sizes = [1, 128], strides = [1, 1]} : vector<21x128xf32> to vector<1x128xf32>
    %4 = arith.mulf %2, %2 : vector<21x128xf32>
    %cst_3 = arith.constant dense<0.000000e+00> : vector<128xf32>
    %5 = vector.multi_reduction <add>, %4, %cst_3 [0] : vector<21x128xf32> to vector<128xf32>
    %6 = vector.shape_cast %5 : vector<128xf32> to vector<1x128xf32>
    %7 = arith.mulf %3, %3 : vector<1x128xf32>
    %8 = arith.subf %6, %7 : vector<1x128xf32>
    %c0_4 = arith.constant 0 : index
    %c0_5 = arith.constant 0 : index
    %9 = vector.load %arg2[%c0_4, %c0_5] : memref<1x10xf32, #tpu.memory_space<vmem>>, vector<1x10xf32>
    %10 = arith.mulf %0, %0 : vector<10x128xf32>
    %cst_6 = arith.constant dense<0.000000e+00> : vector<1x128xf32>
    %11 = tpu.matmul %9, %10, %cst_6 {dimension_numbers = #tpu.dot_dimension_numbers<[1], [0], [0], [1], [0, 0, 1, 1], [], []>} : vector<1x10xf32>, vector<10x128xf32>, vector<1x128xf32> -> vector<1x128xf32>
    %12 = arith.subf %8, %11 : vector<1x128xf32>
    %c128_i32 = arith.constant 128 : i32
    %13 = arith.muli %arg0, %c128_i32 : i32
    %14 = tpu.iota {dimensions = array<i32: 1>} : vector<1x128xi32>
    %15 = vector.broadcast %13 : i32 to vector<1x128xi32>
    %16 = arith.addi %15, %14 : vector<1x128xi32>
    %c4_i32 = arith.constant 4 : i32
    %17 = vector.broadcast %c4_i32 : i32 to vector<1x128xi32>
    %18 = arith.cmpi slt, %16, %17 : vector<1x128xi32>
    %cst_7 = arith.constant 0.000000e+00 : f32
    %19 = vector.broadcast %cst_7 : f32 to vector<1x128xf32>
    %20 = arith.select %18, %12, %19 : vector<1x128xi1>, vector<1x128xf32>
    %cst_8 = arith.constant dense<0.000000e+00> : vector<1xf32>
    %21 = vector.multi_reduction <add>, %20, %cst_8 [1] : vector<1x128xf32> to vector<1xf32>
    %22 = vector.shape_cast %21 : vector<1xf32> to vector<1x1xf32>
    %23 = tpu.iota {dimensions = array<i32: 1>} : vector<1x128xi32>
    %c0_i32 = arith.constant 0 : i32
    %24 = vector.broadcast %c0_i32 : i32 to vector<1x128xi32>
    %25 = arith.cmpi eq, %23, %24 : vector<1x128xi32>
    %cst_9 = arith.constant 0.000000e+00 : f32
    %26 = vector.shape_cast %22 : vector<1x1xf32> to vector<1x1xf32>
    %27 = vector.broadcast %26 : vector<1x1xf32> to vector<1x128xf32>
    %28 = vector.broadcast %cst_9 : f32 to vector<1x128xf32>
    %29 = arith.select %25, %27, %28 : vector<1x128xi1>, vector<1x128xf32>
    %c0_10 = arith.constant 0 : index
    %c0_11 = arith.constant 0 : index
    %30 = vector.load %arg5[%c0_10, %c0_11] : memref<1x128xf32, #tpu.memory_space<vmem>>, vector<1x128xf32>
    tpu.vector_store %arg5[%c0_10, %c0_11], %29 {strides = array<i32>} : memref<1x128xf32, #tpu.memory_space<vmem>>, vector<1x128xf32>,
    %c0_12 = arith.constant 0 : index
    %c0_13 = arith.constant 0 : index
    %31 = vector.load %arg4[%c0_12, %c0_13] : memref<1x128xf32, #tpu.memory_space<vmem>>, vector<1x128xf32>
    tpu.vector_store %arg4[%c0_12, %c0_13], %3 {strides = array<i32>} : memref<1x128xf32, #tpu.memory_space<vmem>>, vector<1x128xf32>,
    return
  }
  func.func @transform_0(%arg0: i32) -> (i32, i32) {
    %c0_i32 = arith.constant 0 : i32
    %c0_i32_0 = arith.constant 0 : i32
    %c0_i32_1 = arith.constant 0 : i32
    return %c0_i32, %c0_i32_0 : i32, i32
  }
  func.func @transform_1(%arg0: i32) -> (i32, i32) {
    %c0_i32 = arith.constant 0 : i32
    %c0_i32_0 = arith.constant 0 : i32
    %c0_i32_1 = arith.constant 0 : i32
    return %c0_i32, %c0_i32_0 : i32, i32
  }
  func.func @transform_2(%arg0: i32) -> (i32, i32) {
    %c0_i32 = arith.constant 0 : i32
    %c0_i32_0 = arith.constant 0 : i32
    return %c0_i32, %arg0 : i32, i32
  }
  func.func @transform_3(%arg0: i32) -> (i32, i32) {
    %c0_i32 = arith.constant 0 : i32
    %c0_i32_0 = arith.constant 0 : i32
    return %c0_i32, %arg0 : i32, i32
  }
  func.func @transform_4(%arg0: i32) -> (i32, i32) {
    %c0_i32 = arith.constant 0 : i32
    %c0_i32_0 = arith.constant 0 : i32
    return %c0_i32, %arg0 : i32, i32
  }
}

</mosaic_0001>

<bundles_post_ra>
// kernel: fm_forward.1
= control target key start
LH: loop header
LB: loop body
LE: loop exit
PB: predicated region body
PF: predicated region fallthrough
CT: control target
= control target key end

     0   :  { %10 = vsyncpa [#allocation3], 0  ;;  %s575_s0 = inlined_call_operand.hbm [shape: f32[21,10], index: 0, kind: input, shape index: {}]   ;;  %s576_s1 = inlined_call_operand.hbm [shape: f32[1,10], index: 1, kind: input, shape index: {}]   ;;  %s577_s2 = inlined_call_operand.hbm [shape: f32[10,128], index: 2, kind: input, shape index: {}]   ;;  %s578_s3 = inlined_call_operand.hbm [shape: f32[1,128], index: 3, kind: output, shape index: {0}]   ;;  %s579_s4 = inlined_call_operand.hbm [shape: f32[1,128], index: 4, kind: output, shape index: {1}]  }
   0x1   :  { %11 = vsyncpa [#allocation6], 0 }
   0x2   :  { %12 = vsyncpa [#allocation4], 0 }
   0x3   :  { %13 = vsyncpa [#allocation10], 0  ;;  %s468_s15 = smov [#allocation5]   ;;  %s469_s17 = smov [#allocation2]  }
   0x4   :  { %s32_s16 = sshll.u32 %s468_s15, 4  ;;  %s19_s18 = sshll.u32 %s469_s17, 4  ;;  %s33_s16 = int_to_ptr.vmem [resolvable:$true] %s32_s16  ;;  %s504_s18 = int_to_ptr.vmem [resolvable:$true] %s19_s18 }
   0x5   :  { %s350_s21 = scalar_lea.hbm %s576_s1, 16 }
   0x6   :  { %p351_p0 = scmp.ne.s32.totalorder %s576_s1, %s350_s21  ;;  %p354_p1 = scmp.lt.u32.totalorder %s350_s21, %s576_s1 }
   0x8   :  { %p356_p2 = pnand %p354_p1, %p351_p0 }
   0xa   :  { %359 = shalt.err (!%p356_p2)
}
   0xb   :  { %s360_s26 = scalar_lea.vmem %s33_s16, 16  ;;  %s364_s27 = scalar_lea.vmem %s33_s16, 32 }
   0xc   :  { %p361_p3 = scmp.ne.s32.totalorder %s33_s16, %s360_s26  ;;  %p365_p4 = scmp.lt.s32.totalorder %s33_s16, %s33_s16 }
   0xd   :  { %p366_p5 = scmp.lt.s32.totalorder %s364_s27, %s360_s26 }
   0xf   :  { %p367_p6 = por %p366_p5, %p365_p4 }
  0x11   :  { %p368_p7 = pnand %p367_p6, %p361_p3 }
  0x13   :  { %371 = shalt.err (!%p368_p7)
}
  0x14   :  { %35 = dma.hbm_to_vmem [thread:$0]  %s576_s1, 16, %s33_s16, [#allocation6]  }
  0x15   :  { %s372_s6 = scalar_lea.hbm %s575_s0, 384 }
  0x16   :  { %p373_p8 = scmp.ne.s32.totalorder %s575_s0, %s372_s6  ;;  %p376_p9 = scmp.lt.u32.totalorder %s372_s6, %s575_s0 }
  0x18   :  { %p378_p10 = pnand %p376_p9, %p373_p8 }
  0x1a   :  { %381 = shalt.err (!%p378_p10)
}
  0x1b   :  { %s382_s11 = scalar_lea.vmem %s504_s18, 384  ;;  %p387_p12 = scmp.lt.s32.totalorder %s504_s18, %s504_s18 }
  0x1c   :  { %p383_p11 = scmp.ne.s32.totalorder %s504_s18, %s382_s11  ;;  %p388_p13 = scmp.lt.s32.totalorder %s382_s11, %s382_s11 }
  0x1e   :  { %p389_p0 = por %p388_p13, %p387_p12 }
  0x20   :  { %p390_p1 = pnand %p389_p0, %p383_p11 }
  0x22   :  { %393 = shalt.err (!%p390_p1)
}
  0x23   :  { %s470_s1 = smov 128   ;;  %s471_s12 = smov 8  }
  0x24   :  { %25 = dma.hbm_to_vmem [thread:$0]  %s575_s0, 384, %s504_s18, [#allocation3], %s470_s1, %s470_s1, %s471_s12  }
  0x25   :  { %s472_s15 = smov [#allocation7]   ;;  %s394_s20 = scalar_lea.hbm %s577_s2, 256 }
  0x26   :  { %s41_s16 = sshll.u32 %s472_s15, 4  ;;  %p395_p2 = scmp.ne.s32.totalorder %s577_s2, %s394_s20  ;;  %s42_s16 = int_to_ptr.vmem [resolvable:$true] %s41_s16 }
  0x27   :  { %p398_p3 = scmp.lt.u32.totalorder %s394_s20, %s577_s2 }
  0x29   :  { %p400_p4 = pnand %p398_p3, %p395_p2 }
  0x2b   :  { %403 = shalt.err (!%p400_p4)
}
  0x2c   :  { %s404_s25 = scalar_lea.vmem %s42_s16, 256  ;;  %p409_p6 = scmp.lt.s32.totalorder %s42_s16, %s42_s16 }
  0x2d   :  { %p405_p5 = scmp.ne.s32.totalorder %s42_s16, %s404_s25  ;;  %p410_p7 = scmp.lt.s32.totalorder %s404_s25, %s404_s25 }
  0x2f   :  { %p411_p8 = por %p410_p7, %p409_p6 }
  0x31   :  { %p412_p9 = pnand %p411_p8, %p405_p5 }
  0x33   :  { %415 = shalt.err (!%p412_p9)
}
  0x34   :  { %47 = dma.hbm_to_vmem [thread:$0]  %s577_s2, 256, %s42_s16, [#allocation6], %s470_s1, %s470_s1, %s471_s12  }
  0x35   :  { %460 = dma.done.wait [#allocation3], 384  }
  0x36   :  { %461 = vsyncadd [#allocation3], 4294966912 }
  0x37   :  { %462 = dma.done.wait [#allocation6], 272  }
  0x38   :  { %463 = vsyncadd [#allocation6], 4294967024  ;;  %v473_v0 = vmov 0.0|0.0   ;;  %vm474_vm0 = vmmov 0   ;;  %v475_v1 = vmov 0.0   ;;  %vm72_vm1 = vcmask 1041408  }
  0x39   :  { %329 = vmatprep.subr.bf16.mxu0 %v473_v0  ;;  %337 = vmatprep.subr.bf16.mxu1 %v473_v0  ;;  %v57_v2 = vld [vmem:[#allocation7] sm:$0xff]  ;;  %v58_v3 = vld [vmem:[#allocation7 + $0x8] sm:$0x3]  ;;  %vm476_vm2 = vmmov 1   ;;  %vm62_vm4 = vcmask 80896   ;;  %v60_v10 = vld [vmem:[#allocation2 + $0x8] sm:$0xff]  ;;  %v251_v29 = vlaneseq }
  0x3a   :  { %313 = vmatprep.mubr.msk.f32.mxu0 %vm474_vm0, %v475_v1  ;;  %319 = vmatprep.mubr.msk.f32.mxu1 %vm474_vm0, %v475_v1  ;;  %vm331_vm3 = vmpackc.low %vm72_vm1, %vm476_vm2  ;;  %v330_v4 = vpack.c.bf16 %v58_v3, %v57_v2  ;;  %v171_v5 = vmul.f32 %v57_v2, %v57_v2  ;;  %v172_v6 = vmul.f32 %v58_v3, %v58_v3  ;;  %v59_v8 = vld [vmem:[#allocation2] sm:$0xff]  ;;  %v61_v9 = vld [vmem:[#allocation2 + $0x10] sm:$0x1f]  ;;  %vm160_vm5 = vcmask 1044480   ;;  %s477_s2 = smov [#allocation8]  }
  0x3b   :  { %v170_v11 = vld [vmem:[#allocation5] sm:$0x1]  ;;  %v252_v32 = vand.u32 127, %v251_v29  ;;  %vm257_vm7 = vcmask 1040384   ;;  %s271_s26 = sshll.u32 %s477_s2, 4  ;;  %s272_s26 = int_to_ptr.vmem [resolvable:$true] %s271_s26 }
  0x3c   :  { %332 = vmatpush3.bf16.msk.msra.mxu0 %vm331_vm3, %v330_v4  ;;  %v334_v7 = vpack.c.bf16 %v172_v6, %v171_v5  ;;  %338 = vmatpush3.bf16.msk.msra.mxu1 %vm331_vm3, %v330_v4  ;;  %s416_s27 = scalar_lea.vmem %s272_s26, 16  ;;  %s420_s28 = scalar_lea.vmem %s272_s26, 32 }
  0x3d   :  { %333 = vmatprep.subr.bf16.mxu1 %v473_v0  ;;  %vm255_vm6 = vcmp.lt.s32.totalorder %v252_v32, 4  ;;  %p417_p10 = scmp.ne.s32.totalorder %s272_s26, %s416_s27  ;;  %p421_p11 = scmp.lt.s32.totalorder %s272_s26, %s272_s26 }
  0x3e   :  { %p422_p12 = scmp.lt.s32.totalorder %s420_s28, %s416_s27 }
  0x3f   :  { %314 = vmatmul.mubr.msk.f32.vlgmr.msra.gmra.mrb[0].mxu0 %vm62_vm4, %v59_v8  ;;  %320 = vmatmul.mubr.msk.f32.vlgmr.msra.gmra.mrb[0].mxu1 %vm62_vm4, %v61_v9 }
  0x40   :  { %316 = vmatprep.mubr.msk.f32.mxu0 %vm474_vm0, %v475_v1  ;;  %336 = vmatpush3.bf16.msk.msra.mxu1 %vm331_vm3, %v334_v7  ;;  %p423_p13 = por %p422_p12, %p421_p11 }
  0x41   :  { %326 = vmatprep.mubr.msk.f32.mxu1 %vm474_vm0, %v475_v1 }
  0x42   :  { %p424_p0 = pnand %p423_p13, %p417_p10 }
  0x43   :  { %317 = vmatmul.mubr.msk.f32.gmra.mrb[2].mxu0 %vm62_vm4, %v60_v10  ;;  %327 = vmatmul.mubr.msk.f32.vlgmr.msra.gmra.mrb[2].mxu1 %vm62_vm4, %v170_v11 }
 0x112   :  { %v142_v12 = vpop.f32.mrb[0].mxu0  ;;  %v152_v13 = vpop.f32.mrb[0].mxu1 }
 0x113   :  { %264 = vst [vmem:[#allocation8] sm:$0x1] %v142_v12  ;;  %v315_v14 = vpop.f32.mrb[1].mxu0  ;;  %v321_v15 = vpop.f32.mrb[1].mxu1  ;;  %v158_v16 = vmul.f32 %v152_v13, %v152_v13  ;;  %v156_v19 = vmul.f32 %v142_v12, %v142_v12 }
 0x115   :  { %v161_v23 = vsel %vm160_vm5, %v158_v16, 0.0 }
 0x116   :  { %v147_v17 = vpop.f32.mrb[2].mxu0  ;;  %v245_v18 = vpop.f32.mrb[2].mxu1 }
 0x117   :  { %v157_v20 = vmul.f32 %v147_v17, %v147_v17  ;;  %v318_v21 = vpop.f32.mrb[3].mxu0  ;;  %v328_v22 = vpop.f32.mrb[3].mxu1 }
 0x119   :  { %v159_v24 = vadd.f32 %v157_v20, %v156_v19 }
 0x11b   :  { %v162_v25 = vadd.f32 %v161_v23, %v159_v24 }
 0x11d   :  { %v163_v26 = vrot.slane %v162_v25, 4 }
 0x11f   :  { %v164_v27 = vadd.f32 %v163_v26, %v162_v25 }
 0x121   :  { %v165_v28 = vrot.slane %v164_v27, 2 }
 0x123   :  { %v166_v30 = vadd.f32 %v165_v28, %v164_v27 }
 0x125   :  { %v167_v31 = vrot.slane %v166_v30, 1 }
 0x127   :  { %v168_v33 = vadd.f32 %v167_v31, %v166_v30 }
 0x129   :  { %v169_v34 = vsub.f32 %v168_v33, %v156_v19 }
 0x12b   :  { %v249_v35 = vsub.f32 %v169_v34, %v245_v18 }
 0x12d   :  { %v256_v36 = vsel %vm255_vm6, %v249_v35, 0.0 }
 0x12e   :  { %v258_v37 = vsel %vm257_vm7, %v256_v36, 0.0 }
 0x12f   :  { %259 = vadd.xlane.f32.xlu0 %v258_v37 }
 0x130   :  { %427 = shalt.err (!%p424_p0)
}
 0x131   :  { %s428_s5 = scalar_lea.hbm %s578_s3, 16 }
 0x132   :  { %p429_p1 = scmp.ne.s32.totalorder %s578_s3, %s428_s5  ;;  %p432_p2 = scmp.lt.u32.totalorder %s428_s5, %s578_s3 }
 0x134   :  { %p434_p3 = pnand %p432_p2, %p429_p1 }
 0x136   :  { %437 = shalt.err (!%p434_p3)
}
 0x137   :  { %274 = dma.vmem_to_hbm [thread:$0]  %s272_s26, 16, %s578_s3, [#allocation4]   ;;  %vm261_vm8 = vcmp.eq.s32.totalorder %v252_v32, 0 }
 0x138   :  { %s478_s1 = smov [#allocation9]  }
 0x139   :  { %s281_s12 = sshll.u32 %s478_s1, 4  ;;  %s282_s12 = int_to_ptr.vmem [resolvable:$true] %s281_s12 }
 0x13a   :  { %s438_s13 = scalar_lea.vmem %s282_s12, 16  ;;  %s442_s14 = scalar_lea.vmem %s282_s12, 32 }
 0x13b   :  { %p439_p4 = scmp.ne.s32.totalorder %s282_s12, %s438_s13  ;;  %p443_p5 = scmp.lt.s32.totalorder %s282_s12, %s282_s12 }
 0x13c   :  { %p444_p6 = scmp.lt.s32.totalorder %s442_s14, %s438_s13 }
 0x13e   :  { %p445_p7 = por %p444_p6, %p443_p5 }
 0x140   :  { %p446_p8 = pnand %p445_p7, %p439_p4 }
 0x1bc   :  { %v260_v38 = vpop.xlane.xlu0 %259 }
 0x1bd   :  { %v262_v39 = vsel %vm261_vm8, %v260_v38, 0.0 }
 0x1be   :  { %263 = vst [vmem:[#allocation9] sm:$0x1] %v262_v39 }
 0x1bf   :  { %449 = shalt.err (!%p446_p8)
}
 0x1c0   :  { %s450_s17 = scalar_lea.hbm %s579_s4, 16 }
 0x1c1   :  { %p451_p9 = scmp.ne.s32.totalorder %s579_s4, %s450_s17  ;;  %p454_p10 = scmp.lt.u32.totalorder %s450_s17, %s579_s4 }
 0x1c3   :  { %p456_p11 = pnand %p454_p10, %p451_p9 }
 0x1c5   :  { %459 = shalt.err (!%p456_p11)
}
 0x1c6   :  { %284 = dma.vmem_to_hbm [thread:$0]  %s282_s12, 16, %s579_s4, [#allocation10]  }
 0x1c7   :  { %464 = dma.done.wait [#allocation4], 16  }
 0x1c8   :  { %465 = vsyncadd [#allocation4], 4294967280 }
 0x1c9   :  { %466 = dma.done.wait [#allocation10], 16  }
 0x1ca   :  { %467 = vsyncadd [#allocation10], 4294967280 }
 0x1cb   :  { %291 = vsyncpa [#allocation3], 1 }
 0x1cc   :  { %292 = vsyncpa [#allocation6], 1 }
 0x1cd   :  { %293 = vsyncpa [#allocation4], 1 }
 0x1ce   :  { %294 = vsyncpa [#allocation10], 1 }

</bundles_post_ra>
